<compile_context>
chip_gen: v7x
topology: tpu7x:2x2x1
jax: 0.10.0
libtpu: 0.0.40
codegen_flags: <defaults>
</compile_context>

<pallas_src>
import numpy as np
import jax
import jax.numpy as jnp
from jax import lax
from jax.experimental import pallas as pl
from jax.experimental.pallas import tpu as pltpu


def _hann_packed_kernel(x_ref, o_ref):
    """Fused (shift + flip + zero-pad + depthwise 3x3 Hann conv + unshift) on a
    packed-cube channel block.

    x_ref, o_ref: VMEM (C_blk, H, W), packed layout.
    """
    x = x_ref[...].astype(jnp.float32)
    cb, H, W = x.shape

    # ---- vertical (sublane) 3-tap pass: 0.25 / 0.5 / 0.25 with seam zeroing ----
    # up[p]  = x[(p-1) % H],  dn[p] = x[(p+1) % H]   (circular wrap)
    up = jnp.concatenate([x[:, H - 1:, :], x[:, :H - 1, :]], axis=1)
    dn = jnp.concatenate([x[:, 1:, :], x[:, :1, :]], axis=1)
    row = lax.broadcasted_iota(jnp.int32, (cb, H, W), 1)
    # zero-padding boundary of the sky image maps to the seam between packed
    # rows H/2-1 and H/2: contributions crossing it are zero.
    up = jnp.where(row == H // 2, 0.0, up)
    dn = jnp.where(row == H // 2 - 1, 0.0, dn)
    v = 0.5 * x + 0.25 * (up + dn)

    # ---- horizontal (lane) 3-tap pass ----
    lt = jnp.concatenate([v[:, :, W - 1:], v[:, :, :W - 1]], axis=2)  # v[(q-1) % W]
    rt = jnp.concatenate([v[:, :, 1:], v[:, :, :1]], axis=2)          # v[(q+1) % W]
    col = lax.broadcasted_iota(jnp.int32, (cb, H, W), 2)
    lt = jnp.where(col == W // 2, 0.0, lt)
    rt = jnp.where(col == W // 2 - 1, 0.0, rt)

    o_ref[...] = (0.5 * v + 0.25 * (lt + rt)).astype(o_ref.dtype)


def _pick_channel_block(C, H, W, itemsize=4, budget_bytes=20 * 1024 * 1024):
    """Largest divisor of C whose double-buffered (2 in + 2 out) footprint fits
    the VMEM budget.  Keeps per-step blocks big (amortizes ~0.35 us/step grid
    overhead) while staying under the scoped VMEM limit on v5e/v6e/v7x."""
    per_chan = 4 * H * W * itemsize
    cap = max(1, budget_bytes // per_chan)
    best = 1
    for d in range(1, C + 1):
        if C % d == 0 and d <= cap:
            best = d
    return int(best)


def hann_conv_cube(cube):
    """cube: (C, H, W) float32 packed image cube -> (C, H, W) packed conv result."""
    C, H, W = cube.shape
    assert H % 2 == 0 and W % 2 == 0, "MPoL packed cubes require even npix"

    c_blk = _pick_channel_block(C, H, W)
    grid = (C // c_blk,)

    return pl.pallas_call(
        _hann_packed_kernel,
        out_shape=jax.ShapeDtypeStruct((C, H, W), cube.dtype),
        grid=grid,
        in_specs=[pl.BlockSpec((c_blk, H, W), lambda c: (c, 0, 0))],
        out_specs=pl.BlockSpec((c_blk, H, W), lambda c: (c, 0, 0)),
        compiler_params=pltpu.CompilerParams(
            dimension_semantics=("parallel",),
            vmem_limit_bytes=48 * 1024 * 1024,
        ),
    )(cube)


def _reference(cube):
    """Pure-jnp replica of the original torch path:
    fftshift -> flip(W) -> zero-padded depthwise 3x3 Hann conv -> flip(W) -> ifftshift."""
    C, H, W = cube.shape
    spec = jnp.array([0.25, 0.5, 0.25], dtype=cube.dtype)
    nugget = jnp.outer(spec, spec)
    sky = jnp.flip(jnp.fft.fftshift(cube, axes=(1, 2)), axis=2)
    xpad = jnp.pad(sky, ((0, 0), (1, 1), (1, 1)))
    out = jnp.zeros_like(cube)
    for di in range(3):
        for dj in range(3):
            out = out + nugget[di, dj] * xpad[:, di:di + H, dj:dj + W]
    return jnp.fft.ifftshift(jnp.flip(out, axis=2), axes=(1, 2))


if __name__ == "__main__":
    nchan, npix = 4, 16
    key = jax.random.PRNGKey(0)
    cube = jax.random.normal(key, (nchan, npix, npix), dtype=jnp.float32)

    out = jax.block_until_ready(hann_conv_cube(cube))

    ref = _reference(cube)
    np.testing.assert_allclose(np.asarray(out), np.asarray(ref),
                               rtol=1e-5, atol=1e-6)

    print("KERNEL_OK")
</pallas_src>

<mosaic_0001>
module attributes {stable_mosaic.version = 11 : i64} {
  func.func @_hann_packed_kernel(%arg0: i32, %arg1: memref<4x16x16xf32, #tpu.memory_space<vmem>>, %arg2: memref<4x16x16xf32, #tpu.memory_space<vmem>>) attributes {dimension_semantics = [#tpu.dimension_semantics<parallel>], iteration_bounds = array<i64: 1>, scalar_prefetch = 0 : i64, scratch_operands = 0 : i64, tpu.core_type = #tpu.core_type<tc>, window_params = [{transform_indices = @transform_0, window_bounds = array<i64: 4, 16, 16>}, {transform_indices = @transform_1, window_bounds = array<i64: 4, 16, 16>}]} {
    %c0 = arith.constant 0 : index
    %c0_0 = arith.constant 0 : index
    %c0_1 = arith.constant 0 : index
    %0 = vector.load %arg1[%c0, %c0_0, %c0_1] : memref<4x16x16xf32, #tpu.memory_space<vmem>>, vector<4x16x16xf32>
    %1 = vector.extract_strided_slice %0 {offsets = [0, 15, 0], sizes = [4, 1, 16], strides = [1, 1, 1]} : vector<4x16x16xf32> to vector<4x1x16xf32>
    %2 = vector.extract_strided_slice %0 {offsets = [0, 0, 0], sizes = [4, 15, 16], strides = [1, 1, 1]} : vector<4x16x16xf32> to vector<4x15x16xf32>
    %3 = tpu.concatenate %1, %2 in 1 : vector<4x1x16xf32>, vector<4x15x16xf32> -> vector<4x16x16xf32>
    %4 = vector.extract_strided_slice %0 {offsets = [0, 1, 0], sizes = [4, 15, 16], strides = [1, 1, 1]} : vector<4x16x16xf32> to vector<4x15x16xf32>
    %5 = vector.extract_strided_slice %0 {offsets = [0, 0, 0], sizes = [4, 1, 16], strides = [1, 1, 1]} : vector<4x16x16xf32> to vector<4x1x16xf32>
    %6 = tpu.concatenate %4, %5 in 1 : vector<4x15x16xf32>, vector<4x1x16xf32> -> vector<4x16x16xf32>
    %7 = tpu.iota {dimensions = array<i32: 1>} : vector<4x16x16xi32>
    %c8_i32 = arith.constant 8 : i32
    %8 = vector.broadcast %c8_i32 : i32 to vector<4x16x16xi32>
    %9 = arith.cmpi eq, %7, %8 : vector<4x16x16xi32>
    %cst = arith.constant 0.000000e+00 : f32
    %10 = vector.broadcast %cst : f32 to vector<4x16x16xf32>
    %11 = arith.select %9, %10, %3 : vector<4x16x16xi1>, vector<4x16x16xf32>
    %c7_i32 = arith.constant 7 : i32
    %12 = vector.broadcast %c7_i32 : i32 to vector<4x16x16xi32>
    %13 = arith.cmpi eq, %7, %12 : vector<4x16x16xi32>
    %cst_2 = arith.constant 0.000000e+00 : f32
    %14 = vector.broadcast %cst_2 : f32 to vector<4x16x16xf32>
    %15 = arith.select %13, %14, %6 : vector<4x16x16xi1>, vector<4x16x16xf32>
    %cst_3 = arith.constant 5.000000e-01 : f32
    %16 = vector.broadcast %cst_3 : f32 to vector<4x16x16xf32>
    %17 = arith.mulf %16, %0 : vector<4x16x16xf32>
    %18 = arith.addf %11, %15 : vector<4x16x16xf32>
    %cst_4 = arith.constant 2.500000e-01 : f32
    %19 = vector.broadcast %cst_4 : f32 to vector<4x16x16xf32>
    %20 = arith.mulf %19, %18 : vector<4x16x16xf32>
    %21 = arith.addf %17, %20 : vector<4x16x16xf32>
    %22 = vector.extract_strided_slice %21 {offsets = [0, 0, 15], sizes = [4, 16, 1], strides = [1, 1, 1]} : vector<4x16x16xf32> to vector<4x16x1xf32>
    %23 = vector.extract_strided_slice %21 {offsets = [0, 0, 0], sizes = [4, 16, 15], strides = [1, 1, 1]} : vector<4x16x16xf32> to vector<4x16x15xf32>
    %24 = tpu.concatenate %22, %23 in 2 : vector<4x16x1xf32>, vector<4x16x15xf32> -> vector<4x16x16xf32>
    %25 = vector.extract_strided_slice %21 {offsets = [0, 0, 1], sizes = [4, 16, 15], strides = [1, 1, 1]} : vector<4x16x16xf32> to vector<4x16x15xf32>
    %26 = vector.extract_strided_slice %21 {offsets = [0, 0, 0], sizes = [4, 16, 1], strides = [1, 1, 1]} : vector<4x16x16xf32> to vector<4x16x1xf32>
    %27 = tpu.concatenate %25, %26 in 2 : vector<4x16x15xf32>, vector<4x16x1xf32> -> vector<4x16x16xf32>
    %28 = tpu.iota {dimensions = array<i32: 2>} : vector<4x16x16xi32>
    %c8_i32_5 = arith.constant 8 : i32
    %29 = vector.broadcast %c8_i32_5 : i32 to vector<4x16x16xi32>
    %30 = arith.cmpi eq, %28, %29 : vector<4x16x16xi32>
    %cst_6 = arith.constant 0.000000e+00 : f32
    %31 = vector.broadcast %cst_6 : f32 to vector<4x16x16xf32>
    %32 = arith.select %30, %31, %24 : vector<4x16x16xi1>, vector<4x16x16xf32>
    %c7_i32_7 = arith.constant 7 : i32
    %33 = vector.broadcast %c7_i32_7 : i32 to vector<4x16x16xi32>
    %34 = arith.cmpi eq, %28, %33 : vector<4x16x16xi32>
    %cst_8 = arith.constant 0.000000e+00 : f32
    %35 = vector.broadcast %cst_8 : f32 to vector<4x16x16xf32>
    %36 = arith.select %34, %35, %27 : vector<4x16x16xi1>, vector<4x16x16xf32>
    %cst_9 = arith.constant 5.000000e-01 : f32
    %37 = vector.broadcast %cst_9 : f32 to vector<4x16x16xf32>
    %38 = arith.mulf %37, %21 : vector<4x16x16xf32>
    %39 = arith.addf %32, %36 : vector<4x16x16xf32>
    %cst_10 = arith.constant 2.500000e-01 : f32
    %40 = vector.broadcast %cst_10 : f32 to vector<4x16x16xf32>
    %41 = arith.mulf %40, %39 : vector<4x16x16xf32>
    %42 = arith.addf %38, %41 : vector<4x16x16xf32>
    %c0_11 = arith.constant 0 : index
    %c0_12 = arith.constant 0 : index
    %c0_13 = arith.constant 0 : index
    %43 = vector.load %arg2[%c0_11, %c0_12, %c0_13] : memref<4x16x16xf32, #tpu.memory_space<vmem>>, vector<4x16x16xf32>
    tpu.vector_store %arg2[%c0_11, %c0_12, %c0_13], %42 {strides = array<i32>} : memref<4x16x16xf32, #tpu.memory_space<vmem>>, vector<4x16x16xf32>,
    return
  }
  func.func @transform_0(%arg0: i32) -> (i32, i32, i32) {
    %c0_i32 = arith.constant 0 : i32
    %c0_i32_0 = arith.constant 0 : i32
    %c0_i32_1 = arith.constant 0 : i32
    return %arg0, %c0_i32, %c0_i32_0 : i32, i32, i32
  }
  func.func @transform_1(%arg0: i32) -> (i32, i32, i32) {
    %c0_i32 = arith.constant 0 : i32
    %c0_i32_0 = arith.constant 0 : i32
    %c0_i32_1 = arith.constant 0 : i32
    return %arg0, %c0_i32, %c0_i32_0 : i32, i32, i32
  }
}

</mosaic_0001>

<bundles_post_ra>
// kernel: tpu_custom_call.1
= control target key start
LH: loop header
LB: loop body
LE: loop exit
PB: predicated region body
PF: predicated region fallthrough
CT: control target
= control target key end

     0   :  { %6 = vsyncpa [#allocation3], 0  ;;  %s636_s0 = inlined_call_operand.hbm [shape: f32[4,16,16], index: 0, kind: input, shape index: {}]   ;;  %s637_s1 = inlined_call_operand.hbm [shape: f32[4,16,16], index: 1, kind: output, shape index: {}]  }
   0x1   :  { %7 = vsyncpa [#allocation4], 0  ;;  %s408_s6 = smov [#allocation2]   ;;  %s360_s10 = scalar_lea.hbm %s636_s0, 1024 }
   0x2   :  { %s13_s7 = sshll.u32 %s408_s6, 4  ;;  %p361_p0 = scmp.ne.s32.totalorder %s636_s0, %s360_s10  ;;  %s14_s7 = int_to_ptr.vmem [resolvable:$true] %s13_s7 }
   0x3   :  { %p364_p1 = scmp.lt.u32.totalorder %s360_s10, %s636_s0 }
   0x5   :  { %p366_p2 = pnand %p364_p1, %p361_p0 }
   0x7   :  { %369 = shalt.err (!%p366_p2)
}
   0x8   :  { %s370_s15 = scalar_lea.vmem %s14_s7, 1024  ;;  %p375_p4 = scmp.lt.s32.totalorder %s14_s7, %s14_s7 }
   0x9   :  { %p371_p3 = scmp.ne.s32.totalorder %s14_s7, %s370_s15  ;;  %p376_p5 = scmp.lt.s32.totalorder %s370_s15, %s370_s15 }
   0xb   :  { %p377_p6 = por %p376_p5, %p375_p4 }
   0xd   :  { %p378_p7 = pnand %p377_p6, %p371_p3 }
   0xf   :  { %381 = shalt.err (!%p378_p7)
}
  0x10   :  { %s409_s16 = smov 128   ;;  %s410_s17 = smov 8  }
  0x11   :  { %19 = dma.hbm_to_vmem [thread:$0]  %s636_s0, 1024, %s14_s7, [#allocation3], %s409_s16, %s409_s16, %s410_s17  }
  0x12   :  { %404 = dma.done.wait [#allocation3], 1024  }
  0x13   :  { %405 = vsyncadd [#allocation3], 4294966272  ;;  %v97_v0 = vlaneseq  ;;  %vm47_vm0 = vcmask 1040384   ;;  %v25_v3 = vld [vmem:[#allocation2 + $0x10] sm:$0xff]  ;;  %v26_v4 = vld [vmem:[#allocation2 + $0x18] sm:$0xff]  ;;  %vm68_vm1 = vcmask 1046528  }
  0x14   :  { %v23_v5 = vld [vmem:[#allocation2] sm:$0xff]  ;;  %v36_v6 = vrot.slane %v26_v4, 7  ;;  %v50_v7 = vrot.slane %v25_v3, 7  ;;  %v72_v8 = vrot.slane %v25_v3, 1  ;;  %v73_v9 = vrot.slane %v26_v4, 1  ;;  %v24_v10 = vld [vmem:[#allocation2 + $0x8] sm:$0xff] }
  0x15   :  { %v442_v1 = vshrl.u32 %v97_v0, 7  ;;  %v122_v11 = vmul.f32 0.5, %v25_v3  ;;  %v35_v12 = vrot.slane %v24_v10, 7  ;;  %v48_v13 = vrot.slane %v23_v5, 7  ;;  %v27_v27 = vld [vmem:[#allocation2 + $0x20] sm:$0xff]  ;;  %v28_v28 = vld [vmem:[#allocation2 + $0x28] sm:$0xff] }
  0x16   :  { %v69_v14 = vrot.slane %v23_v5, 1  ;;  %v65_v15 = vsel %vm47_vm0, %v36_v6, %v50_v7  ;;  %v74_v16 = vsel %vm68_vm1, %v72_v8, %v73_v9  ;;  %v70_v17 = vrot.slane %v24_v10, 1  ;;  %v29_v48 = vld [vmem:[#allocation2 + $0x30] sm:$0xff]  ;;  %v30_v49 = vld [vmem:[#allocation2 + $0x38] sm:$0xff]  ;;  %s411_s0 = smov 113   ;;  %s412_s20 = smov 1  }
  0x17   :  { %v445_v2 = vadd.s32 8, %v442_v1  ;;  %vm110_vm2 = vcmp.eq.s32.totalorder %v442_v1, 7  ;;  %v120_v18 = vmul.f32 0.5, %v23_v5  ;;  %v64_v20 = vsel %vm47_vm0, %v35_v12, %v48_v13  ;;  %s413_s21 = smov 127   ;;  %s414_s22 = smov 15  }
  0x18   :  { %v114_v19 = vsel %vm110_vm2, 0.0, %v74_v16  ;;  %v51_v21 = vsel %vm47_vm0, %v50_v7, %v36_v6  ;;  %v94_v22 = vsel %vm68_vm1, %v73_v9, %v72_v8  ;;  %v71_v24 = vsel %vm68_vm1, %v69_v14, %v70_v17  ;;  %s415_s23 = smov [#allocation5]  }
  0x19   :  { %vm101_vm3 = vcmp.eq.s32.totalorder %v445_v2, 8  ;;  %v130_v23 = vadd.f32 %v114_v19, %v65_v15  ;;  %v123_v26 = vmul.f32 0.5, %v26_v4  ;;  %v112_v29 = vsel %vm110_vm2, 0.0, %v71_v24  ;;  %s340_s24 = sshll.u32 %s415_s23, 4  ;;  %s341_s24 = int_to_ptr.vmem [resolvable:$true] %s340_s24 }
  0x1a   :  { %v105_v25 = vsel %vm101_vm3, 0.0, %v51_v21  ;;  %v49_v31 = vsel %vm47_vm0, %v48_v13, %v35_v12  ;;  %v93_v32 = vsel %vm68_vm1, %v70_v17, %v69_v14  ;;  %v128_v34 = vadd.f32 %v112_v29, %v64_v20  ;;  %s382_s25 = scalar_lea.vmem %s341_s24, 1024  ;;  %p387_p9 = scmp.lt.s32.totalorder %s341_s24, %s341_s24 }
  0x1b   :  { %v131_v30 = vadd.f32 %v105_v25, %v94_v22  ;;  %v138_v33 = vmul.f32 0.25, %v130_v23  ;;  %v103_v35 = vsel %vm101_vm3, 0.0, %v49_v31  ;;  %v121_v36 = vmul.f32 0.5, %v24_v10  ;;  %p383_p8 = scmp.ne.s32.totalorder %s341_s24, %s382_s25  ;;  %p388_p10 = scmp.lt.s32.totalorder %s382_s25, %s382_s25 }
  0x1c   :  { %v129_v38 = vadd.f32 %v103_v35, %v93_v32  ;;  %v37_v39 = vrot.slane %v28_v28, 7  ;;  %v52_v40 = vrot.slane %v27_v27, 7  ;;  %v136_v42 = vmul.f32 0.25, %v128_v34 }
  0x1d   :  { %v139_v37 = vmul.f32 0.25, %v131_v30  ;;  %v465_v41 = vadd.f32 %v138_v33, %v122_v11  ;;  %v75_v43 = vrot.slane %v27_v27, 1  ;;  %v76_v44 = vrot.slane %v28_v28, 1  ;;  %p389_p11 = por %p388_p10, %p387_p9 }
  0x1e   :  { %v137_v46 = vmul.f32 0.25, %v129_v38  ;;  %v53_v47 = vsel %vm47_vm0, %v52_v40, %v37_v39  ;;  %v472_v50 = vadd.f32 %v136_v42, %v120_v18  ;;  %v66_v53 = vsel %vm47_vm0, %v37_v39, %v52_v40 }
  0x1f   :  { %v467_v45 = vadd.f32 %v139_v37, %v123_v26  ;;  %164 = vrot.lane.b32.xlu1 %v465_v41, %s411_s0  ;;  %v95_v51 = vsel %vm68_vm1, %v76_v44, %v75_v43  ;;  %v107_v52 = vsel %vm101_vm3, 0.0, %v53_v47  ;;  %v125_v55 = vmul.f32 0.5, %v28_v28  ;;  %p390_p12 = pnand %p389_p11, %p383_p8 }
  0x20   :  { %v478_v54 = vadd.f32 %v137_v46, %v121_v36  ;;  %v133_v56 = vadd.f32 %v107_v52, %v95_v51  ;;  %v77_v57 = vsel %vm68_vm1, %v75_v43, %v76_v44  ;;  %160 = vrot.lane.b32.xlu0 %v472_v50, %s411_s0  ;;  %v38_v59 = vrot.slane %v30_v49, 7 }
  0x21   :  { %v116_v58 = vsel %vm110_vm2, 0.0, %v77_v57  ;;  %v54_v60 = vrot.slane %v29_v48, 7  ;;  %v78_v61 = vrot.slane %v29_v48, 1  ;;  %v124_v63 = vmul.f32 0.5, %v27_v27 }
  0x22   :  { %v141_v62 = vmul.f32 0.25, %v133_v56  ;;  %v132_v3 = vadd.f32 %v116_v58, %v66_v53  ;;  %v79_v4 = vrot.slane %v30_v49, 1  ;;  %v127_v11 = vmul.f32 0.5, %v30_v49 }
  0x23   :  { %166 = vrot.lane.b32.xlu1 %v467_v45, %s411_s0  ;;  %v55_v5 = vsel %vm47_vm0, %v54_v60, %v38_v59  ;;  %v67_v6 = vsel %vm47_vm0, %v38_v59, %v54_v60  ;;  %v126_v17 = vmul.f32 0.5, %v29_v48  ;;  %v544_v43 = vand.u32 127, %v97_v0 }
  0x24   :  { %v489_v7 = vadd.f32 %v141_v62, %v125_v55  ;;  %v140_v8 = vmul.f32 0.25, %v132_v3  ;;  %v96_v9 = vsel %vm68_vm1, %v79_v4, %v78_v61  ;;  %v109_v10 = vsel %vm101_vm3, 0.0, %v55_v5  ;;  %162 = vrot.lane.b32.xlu0 %v478_v54, %s411_s0 }
  0x25   :  { %v135_v12 = vadd.f32 %v109_v10, %v96_v9  ;;  %v80_v13 = vsel %vm68_vm1, %v78_v61, %v79_v4  ;;  %vm208_vm4 = vcmask 7168   ;;  %vm265_vm5 = vcmask 121856  }
  0x26   :  { %v497_v14 = vadd.f32 %v140_v8, %v124_v63  ;;  %v118_v15 = vsel %vm110_vm2, 0.0, %v80_v13  ;;  %vm276_vm6 = vcmp.eq.s32.totalorder %v544_v43, 8  ;;  %vm285_vm7 = vcmp.eq.s32.totalorder %v544_v43, 7 }
  0x27   :  { %170 = vrot.lane.b32.xlu1 %v489_v7, %s411_s0  ;;  %v143_v16 = vmul.f32 0.25, %v135_v12  ;;  %v134_v18 = vadd.f32 %v118_v15, %v67_v6  ;;  %v295_v56 = vmul.f32 0.5, %v478_v54  ;;  %vm326_vm8 = vcmask 130048  }
  0x28   :  { %168 = vrot.lane.b32.xlu0 %v497_v14, %s411_s0  ;;  %v294_v60 = vmul.f32 0.5, %v472_v50  ;;  %v297_v8 = vmul.f32 0.5, %v467_v45 }
  0x29   :  { %v505_v2 = vadd.f32 %v143_v16, %v127_v11  ;;  %v142_v19 = vmul.f32 0.25, %v134_v18 }
  0x2b   :  { %174 = vrot.lane.b32.xlu1 %v505_v2, %s411_s0  ;;  %v509_v20 = vadd.f32 %v142_v19, %v126_v17  ;;  %v296_v17 = vmul.f32 0.5, %v465_v41 }
  0x2d   :  { %172 = vrot.lane.b32.xlu0 %v509_v20, %s411_s0 }
  0x2f   :  { %186 = vrot.lane.b32.xlu1 %v478_v54, %s412_s20 }
  0x31   :  { %184 = vrot.lane.b32.xlu0 %v472_v50, %s412_s20 }
  0x33   :  { %190 = vrot.lane.b32.xlu1 %v467_v45, %s412_s20 }
  0x35   :  { %188 = vrot.lane.b32.xlu0 %v465_v41, %s412_s20 }
  0x37   :  { %194 = vrot.lane.b32.xlu1 %v489_v7, %s412_s20 }
  0x39   :  { %192 = vrot.lane.b32.xlu0 %v497_v14, %s412_s20 }
  0x3b   :  { %198 = vrot.lane.b32.xlu1 %v505_v2, %s412_s20 }
  0x3d   :  { %196 = vrot.lane.b32.xlu0 %v509_v20, %s412_s20 }
  0x3f   :  { %219 = vrot.lane.b32.xlu1 %v478_v54, %s413_s21 }
  0x41   :  { %217 = vrot.lane.b32.xlu0 %v472_v50, %s413_s21 }
  0x43   :  { %223 = vrot.lane.b32.xlu1 %v467_v45, %s413_s21 }
  0x45   :  { %221 = vrot.lane.b32.xlu0 %v465_v41, %s413_s21 }
  0x47   :  { %227 = vrot.lane.b32.xlu1 %v489_v7, %s413_s21 }
  0x49   :  { %225 = vrot.lane.b32.xlu0 %v497_v14, %s413_s21 }
  0x4b   :  { %231 = vrot.lane.b32.xlu1 %v505_v2, %s413_s21 }
  0x4d   :  { %229 = vrot.lane.b32.xlu0 %v509_v20, %s413_s21 }
  0x4f   :  { %243 = vrot.lane.b32.xlu1 %v478_v54, %s414_s22 }
  0x51   :  { %241 = vrot.lane.b32.xlu0 %v472_v50, %s414_s22 }
  0x53   :  { %247 = vrot.lane.b32.xlu1 %v467_v45, %s414_s22 }
  0x55   :  { %245 = vrot.lane.b32.xlu0 %v465_v41, %s414_s22 }
  0x57   :  { %251 = vrot.lane.b32.xlu1 %v489_v7, %s414_s22 }
  0x59   :  { %249 = vrot.lane.b32.xlu0 %v497_v14, %s414_s22 }
  0x5b   :  { %255 = vrot.lane.b32.xlu1 %v505_v2, %s414_s22 }
  0x5d   :  { %253 = vrot.lane.b32.xlu0 %v509_v20, %s414_s22 }
  0x91   :  { %v165_v1 = vpop.permute.xlu1 %164 }
  0x92   :  { %v161_v21 = vpop.permute.xlu0 %160 }
  0x95   :  { %v167_v22 = vpop.permute.xlu1 %166 }
  0x96   :  { %v163_v23 = vpop.permute.xlu0 %162 }
  0x99   :  { %v171_v24 = vpop.permute.xlu1 %170 }
  0x9a   :  { %v169_v25 = vpop.permute.xlu0 %168 }
  0x9d   :  { %v537_v26 = vpop.permute.xlu1 %174 }
  0x9f   :  { %v539_v27 = vpop.permute.xlu0 %172 }
  0xa1   :  { %v187_v28 = vpop.permute.xlu1 %186 }
  0xa2   :  { %v210_v47 = vsel %vm208_vm4, %v163_v23, %v187_v28 }
  0xa3   :  { %v185_v29 = vpop.permute.xlu0 %184  ;;  %v278_v0 = vsel %vm276_vm6, 0.0, %v210_v47  ;;  %v301_v47 = vmul.f32 0.5, %v505_v2 }
  0xa4   :  { %v209_v49 = vsel %vm208_vm4, %v161_v21, %v185_v29 }
  0xa5   :  { %v191_v30 = vpop.permute.xlu1 %190  ;;  %v277_v59 = vsel %vm276_vm6, 0.0, %v209_v49 }
  0xa6   :  { %v212_v55 = vsel %vm208_vm4, %v167_v22, %v191_v30 }
  0xa7   :  { %v189_v31 = vpop.permute.xlu0 %188  ;;  %v280_v54 = vsel %vm276_vm6, 0.0, %v212_v55 }
  0xa8   :  { %v211_v63 = vsel %vm208_vm4, %v165_v1, %v189_v31 }
  0xa9   :  { %v195_v32 = vpop.permute.xlu1 %194  ;;  %v279_v15 = vsel %vm276_vm6, 0.0, %v211_v63 }
  0xaa   :  { %v214_v6 = vsel %vm208_vm4, %v171_v24, %v195_v32 }
  0xab   :  { %v193_v33 = vpop.permute.xlu0 %192  ;;  %v282_v23 = vsel %vm276_vm6, 0.0, %v214_v6 }
  0xac   :  { %v213_v16 = vsel %vm208_vm4, %v169_v25, %v193_v33  ;;  %v299_v25 = vmul.f32 0.5, %v489_v7  ;;  %v298_v7 = vmul.f32 0.5, %v497_v14 }
  0xad   :  { %v199_v34 = vpop.permute.xlu1 %198  ;;  %v281_v33 = vsel %vm276_vm6, 0.0, %v213_v16 }
  0xae   :  { %v216_v24 = vsel %vm208_vm4, %v537_v26, %v199_v34 }
  0xaf   :  { %v541_v35 = vpop.permute.xlu0 %196 }
  0xb0   :  { %v215_v26 = vsel %vm208_vm4, %v539_v27, %v541_v35 }
  0xb1   :  { %v220_v36 = vpop.permute.xlu1 %219 }
  0xb3   :  { %v218_v37 = vpop.permute.xlu0 %217 }
  0xb5   :  { %v224_v38 = vpop.permute.xlu1 %223 }
  0xb7   :  { %v222_v39 = vpop.permute.xlu0 %221 }
  0xb9   :  { %v228_v40 = vpop.permute.xlu1 %227 }
  0xbb   :  { %v226_v42 = vpop.permute.xlu0 %225 }
  0xbd   :  { %v546_v44 = vpop.permute.xlu1 %231 }
  0xbf   :  { %v548_v46 = vpop.permute.xlu0 %229 }
  0xc1   :  { %v244_v48 = vpop.permute.xlu1 %243 }
  0xc2   :  { %v267_v51 = vsel %vm265_vm5, %v220_v36, %v244_v48 }
  0xc3   :  { %v287_v52 = vsel %vm285_vm7, 0.0, %v267_v51  ;;  %v242_v53 = vpop.permute.xlu0 %241 }
  0xc4   :  { %v303_v57 = vadd.f32 %v287_v52, %v278_v0  ;;  %v266_v58 = vsel %vm265_vm5, %v218_v37, %v242_v53  ;;  %v300_v53 = vmul.f32 0.5, %v509_v20 }
  0xc5   :  { %v286_v61 = vsel %vm285_vm7, 0.0, %v266_v58  ;;  %v248_v62 = vpop.permute.xlu1 %247 }
  0xc6   :  { %v311_v3 = vmul.f32 0.25, %v303_v57  ;;  %v302_v4 = vadd.f32 %v286_v61, %v277_v59  ;;  %v269_v5 = vsel %vm265_vm5, %v224_v38, %v248_v62 }
  0xc7   :  { %v289_v50 = vsel %vm285_vm7, 0.0, %v269_v5  ;;  %v246_v9 = vpop.permute.xlu0 %245 }
  0xc8   :  { %v319_v10 = vadd.f32 %v311_v3, %v295_v56  ;;  %v310_v11 = vmul.f32 0.25, %v302_v4  ;;  %v305_v12 = vadd.f32 %v289_v50, %v280_v54  ;;  %v268_v13 = vsel %vm265_vm5, %v222_v39, %v246_v9 }
  0xc9   :  { %v288_v18 = vsel %vm285_vm7, 0.0, %v268_v13  ;;  %v252_v45 = vpop.permute.xlu1 %251 }
  0xca   :  { %328 = vst.msk [vmem:[#allocation5 + $0x8] sm:$0xff] %vm326_vm8, %v319_v10  ;;  %v318_v19 = vadd.f32 %v310_v11, %v294_v60  ;;  %v313_v1 = vmul.f32 0.25, %v305_v12  ;;  %v304_v21 = vadd.f32 %v288_v18, %v279_v15  ;;  %v271_v22 = vsel %vm265_vm5, %v228_v40, %v252_v45 }
  0xcb   :  { %v291_v41 = vsel %vm285_vm7, 0.0, %v271_v22  ;;  %v250_v28 = vpop.permute.xlu0 %249 }
  0xcc   :  { %327 = vst.msk [vmem:[#allocation5] sm:$0xff] %vm326_vm8, %v318_v19  ;;  %v321_v29 = vadd.f32 %v313_v1, %v297_v8  ;;  %v312_v30 = vmul.f32 0.25, %v304_v21  ;;  %v307_v31 = vadd.f32 %v291_v41, %v282_v23  ;;  %v270_v32 = vsel %vm265_vm5, %v226_v42, %v250_v28 }
  0xcd   :  { %v290_v34 = vsel %vm285_vm7, 0.0, %v270_v32  ;;  %v256_v36 = vpop.permute.xlu1 %255  ;;  %v284_v42 = vsel %vm276_vm6, 0.0, %v216_v24 }
  0xce   :  { %330 = vst.msk [vmem:[#allocation5 + $0x18] sm:$0xff] %vm326_vm8, %v321_v29  ;;  %v320_v37 = vadd.f32 %v312_v30, %v296_v17  ;;  %v315_v38 = vmul.f32 0.25, %v307_v31  ;;  %v306_v39 = vadd.f32 %v290_v34, %v281_v33  ;;  %v273_v40 = vsel %vm265_vm5, %v546_v44, %v256_v36 }
  0xcf   :  { %v293_v14 = vsel %vm285_vm7, 0.0, %v273_v40  ;;  %v254_v27 = vpop.permute.xlu0 %253  ;;  %v283_v44 = vsel %vm276_vm6, 0.0, %v215_v26 }
  0xd0   :  { %329 = vst.msk [vmem:[#allocation5 + $0x10] sm:$0xff] %vm326_vm8, %v320_v37  ;;  %v323_v35 = vadd.f32 %v315_v38, %v299_v25  ;;  %v314_v48 = vmul.f32 0.25, %v306_v39  ;;  %v309_v49 = vadd.f32 %v293_v14, %v284_v42  ;;  %v272_v51 = vsel %vm265_vm5, %v548_v46, %v254_v27 }
  0xd1   :  { %v292_v0 = vsel %vm285_vm7, 0.0, %v272_v51 }
  0xd2   :  { %332 = vst.msk [vmem:[#allocation5 + $0x28] sm:$0xff] %vm326_vm8, %v323_v35  ;;  %v322_v2 = vadd.f32 %v314_v48, %v298_v7  ;;  %v317_v52 = vmul.f32 0.25, %v309_v49  ;;  %v308_v55 = vadd.f32 %v292_v0, %v283_v44 }
  0xd4   :  { %331 = vst.msk [vmem:[#allocation5 + $0x20] sm:$0xff] %vm326_vm8, %v322_v2  ;;  %v325_v56 = vadd.f32 %v317_v52, %v301_v47  ;;  %v316_v57 = vmul.f32 0.25, %v308_v55 }
  0xd6   :  { %334 = vst.msk [vmem:[#allocation5 + $0x38] sm:$0xff] %vm326_vm8, %v325_v56  ;;  %v324_v46 = vadd.f32 %v316_v57, %v300_v53 }
  0xd8   :  { %333 = vst.msk [vmem:[#allocation5 + $0x30] sm:$0xff] %vm326_vm8, %v324_v46 }
  0xd9   :  { %393 = shalt.err (!%p390_p12)
}
  0xda   :  { %s394_s28 = scalar_lea.hbm %s637_s1, 1024 }
  0xdb   :  { %p395_p13 = scmp.ne.s32.totalorder %s637_s1, %s394_s28  ;;  %p398_p0 = scmp.lt.u32.totalorder %s394_s28, %s637_s1 }
  0xdd   :  { %p400_p1 = pnand %p398_p0, %p395_p13 }
  0xdf   :  { %403 = shalt.err (!%p400_p1)
}
  0xe0   :  { %346 = dma.vmem_to_hbm [thread:$0]  %s341_s24, 1024, %s637_s1, [#allocation4], %s409_s16, %s409_s16, %s410_s17  }
  0xe1   :  { %406 = dma.done.wait [#allocation4], 1024  }
  0xe2   :  { %407 = vsyncadd [#allocation4], 4294966272 }
  0xe3   :  { %350 = vsyncpa [#allocation3], 1 }
  0xe4   :  { %351 = vsyncpa [#allocation4], 1 }

</bundles_post_ra>
